<compile_context>
chip_gen: v7x
topology: tpu7x:2x2x1
jax: 0.10.0
libtpu: 0.0.40
codegen_flags: <defaults>
</compile_context>

<pallas_src>
import jax
import jax.numpy as jnp
from jax.experimental import pallas as pl
from jax.experimental.pallas import tpu as pltpu


def _pde_residual_kernel(params_ref, u_ref, d2x_ref, d2y_ref, out_ref):
    # params_ref: SMEM (scalar prefetch), shape (4,) -> p1, p2, p3, p4
    # u_ref/d2x_ref/d2y_ref: VMEM (tile_b, tile_n)
    # out_ref: VMEM (tile_b, tile_n)
    p1 = params_ref[0].astype(jnp.float32)
    p2 = params_ref[1].astype(jnp.float32)
    p3 = params_ref[2].astype(jnp.float32)
    p4 = params_ref[3].astype(jnp.float32)
    acc = (p1 * d2x_ref[...].astype(jnp.float32)
           + p2 * d2y_ref[...].astype(jnp.float32)
           + p3 * u_ref[...].astype(jnp.float32)
           + p4)
    out_ref[...] = acc.astype(out_ref.dtype)


def _per_buffer_budget_bytes():
    """Generation-aware per-tile budget and physical VMEM capacity."""
    try:
        cap = int(pltpu.get_tpu_info().vmem_capacity_bytes)
    except Exception:
        cap = 64 << 20  # conservative (v7x per-TensorCore) fallback
    # 4 arrays (3 inputs + 1 output) x 2 double-buffers = 8 live tiles;
    # keep ~half of physical VMEM as headroom.
    per_buffer = min(4 << 20, (cap // 2) // 8)
    return max(per_buffer, 8 * 128 * 4), cap


def _pick_tile(dim, unit, max_elems):
    """Full dim if it fits the budget, else the largest `unit` multiple that
    does; ragged last blocks are handled by cdiv grids."""
    cap = max(unit, (max_elems // unit) * unit)
    return dim if dim <= cap else cap


def pde_residual_forward(u, d2udx2, d2udy2, params, Xs=None,
                         *, min_pallas_bytes=4 << 20):
    """u, d2udx2, d2udy2: [BS, NV]; params: [4]; Xs unused. Returns [BS, NV]."""
    del Xs  # unused by this PDE residual (matches the PyTorch forward)
    assert u.shape == d2udx2.shape == d2udy2.shape and u.ndim == 2

    orig_shape = u.shape
    bs, nv = orig_shape
    dtype = u.dtype
    itemsize = jnp.dtype(dtype).itemsize

    # Small-problem gate: XLA fusion beats a standalone pallas_call round-trip.
    if bs * nv * itemsize < min_pallas_bytes:
        p1, p2, p3, p4 = params[0], params[1], params[2], params[3]
        return (p1 * d2udx2 + p2 * d2udy2 + p3 * u + p4).astype(dtype)

    # Lane-dense reshape: widen a narrow last dim (free: elementwise op on
    # contiguous planes) so stores are unmasked full-lane vst.
    if nv < 512:
        total = bs * nv
        for wide in (4096, 2048, 1024, 512):
            if total % wide == 0:
                u = u.reshape(total // wide, wide)
                d2udx2 = d2udx2.reshape(total // wide, wide)
                d2udy2 = d2udy2.reshape(total // wide, wide)
                bs, nv = total // wide, wide
                break

    per_buffer_bytes, vmem_cap = _per_buffer_budget_bytes()
    max_elems = per_buffer_bytes // itemsize
    unit_b = max(8, 32 // itemsize)          # sublane packing: f32=8, bf16=16, int8=32

    tile_n = _pick_tile(nv, 128, min(max_elems, 8192))
    tile_b = _pick_tile(bs, unit_b, max(unit_b, max_elems // max(tile_n, 1)))

    grid_b = pl.cdiv(bs, tile_b)
    grid_n = pl.cdiv(nv, tile_n)
    # Make sure both v7x TensorCores get work: if the whole problem landed in
    # one block, split the batch axis (preferred) or the lane axis in two.
    if grid_b * grid_n == 1:
        if bs >= 2 * unit_b:
            tile_b = ((pl.cdiv(bs, 2) + unit_b - 1) // unit_b) * unit_b
            grid_b = pl.cdiv(bs, tile_b)
        elif nv >= 2 * 128:
            tile_n = ((pl.cdiv(nv, 2) + 127) // 128) * 128
            grid_n = pl.cdiv(nv, tile_n)

    tile_bytes = tile_b * tile_n * itemsize
    vmem_limit = int(min(vmem_cap, max(32 << 20, 8 * tile_bytes + (8 << 20))))

    def _tile_map(i, j, params_ref):        # scalar-prefetch ref is positional
        return (i, j)

    tile_spec = pl.BlockSpec((tile_b, tile_n), _tile_map)

    out = pl.pallas_call(
        _pde_residual_kernel,
        out_shape=jax.ShapeDtypeStruct((bs, nv), dtype),
        grid_spec=pltpu.PrefetchScalarGridSpec(
            num_scalar_prefetch=1,           # params -> SMEM before the grid
            grid=(grid_b, grid_n),
            in_specs=[tile_spec, tile_spec, tile_spec],
            out_specs=tile_spec,
        ),
        compiler_params=pltpu.CompilerParams(
            dimension_semantics=("parallel", "parallel"),
            vmem_limit_bytes=vmem_limit),
        cost_estimate=pl.CostEstimate(
            flops=6 * bs * nv,
            bytes_accessed=4 * bs * nv * itemsize,
            transcendentals=0),
    )(params, u, d2udx2, d2udy2)

    return out.reshape(orig_shape)


def pde_func_forward(u_dus, Xs, params, **kwargs):
    """Mirrors PDEFunc.forward(u_dus, Xs): u_dus is the derivative list sorted
    (0,0),(1,0),(0,1),(2,0),(1,1),(0,2); only u, d2u/dx2, d2u/dy2 are used."""
    u, d2udx2, d2udy2 = u_dus[0], u_dus[3], u_dus[5]
    return pde_residual_forward(u, d2udx2, d2udy2, params, Xs=Xs, **kwargs)


if __name__ == "__main__":
    BS, NV = 16, 128  # batch, vector size (lane-friendly)

    key = jax.random.PRNGKey(0)
    keys = jax.random.split(key, 7)

    # u, du/dx, du/dy, d2u/dx2, d2u/dxdy, d2u/dy2 -- each [BS, NV], unstacked.
    u_dus = [jax.random.normal(keys[i], (BS, NV), dtype=jnp.float32)
             for i in range(6)]
    # Xs is accepted by the PyTorch forward but never used in the residual.
    Xs = jax.random.normal(keys[6], (BS, 2), dtype=jnp.float32)  # unused

    # Deterministic parameter init, matching torch.tensor([1, 1.0, -5, 5]).
    test_param = jnp.array([1.0, 1.0, -5.0, 5.0], dtype=jnp.float32)

    # TODO(synk): in production, leave min_pallas_bytes at its default so toy
    # sizes fuse into the producer via plain XLA; forced here to exercise the
    # Pallas kernel path.
    resid = pde_func_forward(u_dus, Xs, test_param, min_pallas_bytes=0)
    resid = jax.block_until_ready(resid)

    # Reference check (plain JAX) for semantics.
    p1, p2, p3, p4 = test_param
    ref = p1 * u_dus[3] + p2 * u_dus[5] + p3 * u_dus[0] + p4
    assert resid.shape == (BS, NV)
    assert jnp.allclose(resid, ref, atol=1e-6, rtol=1e-6)

    print("KERNEL_OK")
</pallas_src>

<mosaic_0001>
module attributes {stable_mosaic.version = 11 : i64} {
  func.func @_pde_residual_kernel(%arg0: i32, %arg1: i32, %arg2: memref<4xf32, #tpu.memory_space<smem>>, %arg3: memref<1x1024xf32, #tpu.memory_space<vmem>>, %arg4: memref<1x1024xf32, #tpu.memory_space<vmem>>, %arg5: memref<1x1024xf32, #tpu.memory_space<vmem>>, %arg6: memref<1x1024xf32, #tpu.memory_space<vmem>>) attributes {dimension_semantics = [#tpu.dimension_semantics<parallel>, #tpu.dimension_semantics<parallel>], iteration_bounds = array<i64: 1, 2>, scalar_prefetch = 1 : i64, scratch_operands = 0 : i64, tpu.core_type = #tpu.core_type<tc>, window_params = [{transform_indices = @transform_0, window_bounds = array<i64: 1, 1024>}, {transform_indices = @transform_1, window_bounds = array<i64: 1, 1024>}, {transform_indices = @transform_2, window_bounds = array<i64: 1, 1024>}, {transform_indices = @transform_3, window_bounds = array<i64: 1, 1024>}]} {
    %c0 = arith.constant 0 : index
    %0 = memref.load %arg2[%c0] : memref<4xf32, #tpu.memory_space<smem>>
    %c1 = arith.constant 1 : index
    %1 = memref.load %arg2[%c1] : memref<4xf32, #tpu.memory_space<smem>>
    %c2 = arith.constant 2 : index
    %2 = memref.load %arg2[%c2] : memref<4xf32, #tpu.memory_space<smem>>
    %c3 = arith.constant 3 : index
    %3 = memref.load %arg2[%c3] : memref<4xf32, #tpu.memory_space<smem>>
    %c0_0 = arith.constant 0 : index
    %c0_1 = arith.constant 0 : index
    %4 = vector.load %arg4[%c0_0, %c0_1] : memref<1x1024xf32, #tpu.memory_space<vmem>>, vector<1x1024xf32>
    %5 = vector.broadcast %0 : f32 to vector<1x1024xf32>
    %6 = arith.mulf %5, %4 : vector<1x1024xf32>
    %c0_2 = arith.constant 0 : index
    %c0_3 = arith.constant 0 : index
    %7 = vector.load %arg5[%c0_2, %c0_3] : memref<1x1024xf32, #tpu.memory_space<vmem>>, vector<1x1024xf32>
    %8 = vector.broadcast %1 : f32 to vector<1x1024xf32>
    %9 = arith.mulf %8, %7 : vector<1x1024xf32>
    %10 = arith.addf %6, %9 : vector<1x1024xf32>
    %c0_4 = arith.constant 0 : index
    %c0_5 = arith.constant 0 : index
    %11 = vector.load %arg3[%c0_4, %c0_5] : memref<1x1024xf32, #tpu.memory_space<vmem>>, vector<1x1024xf32>
    %12 = vector.broadcast %2 : f32 to vector<1x1024xf32>
    %13 = arith.mulf %12, %11 : vector<1x1024xf32>
    %14 = arith.addf %10, %13 : vector<1x1024xf32>
    %15 = vector.broadcast %3 : f32 to vector<1x1024xf32>
    %16 = arith.addf %14, %15 : vector<1x1024xf32>
    %c0_6 = arith.constant 0 : index
    %c0_7 = arith.constant 0 : index
    %17 = vector.load %arg6[%c0_6, %c0_7] : memref<1x1024xf32, #tpu.memory_space<vmem>>, vector<1x1024xf32>
    tpu.vector_store %arg6[%c0_6, %c0_7], %16 {strides = array<i32>} : memref<1x1024xf32, #tpu.memory_space<vmem>>, vector<1x1024xf32>,
    return
  }
  func.func @transform_0(%arg0: i32, %arg1: i32, %arg2: memref<4xf32, #tpu.memory_space<smem>>) -> (i32, i32) {
    %c0_i32 = arith.constant 0 : i32
    return %arg0, %arg1 : i32, i32
  }
  func.func @transform_1(%arg0: i32, %arg1: i32, %arg2: memref<4xf32, #tpu.memory_space<smem>>) -> (i32, i32) {
    %c0_i32 = arith.constant 0 : i32
    return %arg0, %arg1 : i32, i32
  }
  func.func @transform_2(%arg0: i32, %arg1: i32, %arg2: memref<4xf32, #tpu.memory_space<smem>>) -> (i32, i32) {
    %c0_i32 = arith.constant 0 : i32
    return %arg0, %arg1 : i32, i32
  }
  func.func @transform_3(%arg0: i32, %arg1: i32, %arg2: memref<4xf32, #tpu.memory_space<smem>>) -> (i32, i32) {
    %c0_i32 = arith.constant 0 : i32
    return %arg0, %arg1 : i32, i32
  }
}

</mosaic_0001>

<bundles_post_ra>
// kernel: tpu_custom_call.1
= control target key start
LH: loop header
LB: loop body
LE: loop exit
PB: predicated region body
PF: predicated region fallthrough
CT: control target
= control target key end

     0   :  { %s1062_s0 = inlined_call_operand.hbm [shape: f32[4], index: 0, kind: input, shape index: {}]   ;;  %s1063_s1 = inlined_call_operand.hbm [shape: f32[1,2048], index: 1, kind: input, shape index: {}]   ;;  %s1064_s2 = inlined_call_operand.hbm [shape: f32[1,2048], index: 2, kind: input, shape index: {}]   ;;  %s1065_s3 = inlined_call_operand.hbm [shape: f32[1,2048], index: 3, kind: input, shape index: {}]   ;;  %s1066_s4 = inlined_call_operand.hbm [shape: f32[1,2048], index: 4, kind: output, shape index: {}]  }
   0x1   :  { %1072 = sst [smem:[#allocation18_spill]] %s1064_s2  ;;  %s566_s17 = scalar_lea.hbm %s1062_s0, 16 }
   0x2   :  { %p567_p0 = scmp.ne.s32.totalorder %s1062_s0, %s566_s17  ;;  %p570_p1 = scmp.lt.u32.totalorder %s566_s17, %s1062_s0 }
   0x4   :  { %p572_p2 = pnand %p570_p1, %p567_p0 }
   0x6   :  { %575 = shalt.err (!%p572_p2)  }
   0x7   :  { %s756_s22 = smov [#allocation3]  }
   0x8   :  { %10 = dma.hbm_to_smem %s1062_s0, 16, %s756_s22, [#allocation2] }
   0x9   :  { %718 = dma.done.wait [#allocation2], 16 }
   0xa   :  { %719 = vsyncadd [#allocation2], 4294967280 }
   0xb   :  { %12 = sfence }
   0xc   :  { %13 = vsyncpa [#allocation5], 0 }
   0xd   :  { %15 = vsyncpa [#allocation5 + $0x1], 0 }
   0xe   :  { %16 = vsyncpa [#allocation8], 0 }
   0xf   :  { %18 = vsyncpa [#allocation8 + $0x1], 0 }
  0x10   :  { %19 = vsyncpa [#allocation6], 0 }
  0x11   :  { %21 = vsyncpa [#allocation6 + $0x1], 0  ;;  %s798_s25 = smov 0   ;;  %s800_s26 = smov 0  }
  0x12   :  { %s802_s27 = smov 0   ;;  %s804_s28 = smov 0  }
  0x13   :  { %s806_s29 = smov 0   ;;  %s808_s0 = smov 0  }
  0x14 LB: > { %1073 = sst [smem:[#allocation15_spill]] %s750_s29  ;;  %s829_s30 = sadd.s32 4294967295, %s754_s0   ;;  %s754_s0 = sphi %s808_s0, %s27_s0   ;;  %s750_s29 = sphi %s806_s29, %s1094_s29   ;;  %s746_s28 = sphi %s804_s28, %s1093_s28   ;;  %s742_s27 = sphi %s802_s27, %s1097_s27   ;;  %s738_s26 = sphi %s800_s26, %s1096_s26   ;;  %s734_s25 = sphi %s798_s25, %s1095_s25  }
  0x15   : > { %s464_s5 = sadd.s32 4294967294, %s754_s0   ;;  %s36_s6 = sadd.s32 1, %s750_s29 }
  0x16   : > { %s48_s7 = sadd.s32 1, %s742_s27  ;;  %p37_p3 = scmp.ge.s32.totalorder %s36_s6, 2 }
  0x17   : > { %p55_p4 = scmp.ne.s32.totalorder %s742_s27, %s738_s26  ;;  %p56_p5 = scmp.eq.s32.totalorder %s754_s0, 0 }
  0x18   : > { %p61_p6 = scmp.ne.s32.totalorder %s738_s26, %s734_s25  ;;  %s1099_s6 = smov (%p37_p3, %s36_s6), 0 }
  0x19   : > { %1074 = sst [smem:[#allocation16_spill]] %s1099_s6  ;;  %p841_p7 = por %p56_p5, %p55_p4 }
  0x1a   : > { %p62_p8 = scmp.eq.s32.totalorder %s829_s30, 0  ;;  %s44_s9 = ssub.s32 %s750_s29, %s1099_s6 }
  0x1b   : > { %p143_p9 = scmp.eq.s32.totalorder %s829_s30, 1  ;;  %p46_p10 = scmp.eq.s32.totalorder %s44_s9, 0 }
  0x1c   : > { %p849_p11 = por %p62_p8, %p61_p6  ;;  %p149_p13 = scmp.eq.s32.totalorder %s464_s5, 1 }
  0x1d   : > { %p853_p12 = por %p143_p9, %p55_p4  ;;  %p515_p2 = scmp.lt.s32.totalorder %s754_s0, 2 }
  0x1e   : > { %s1076_s10 = scalar_select %p849_p11, 1, 0 }
  0x1f   : > { %s1077_s11 = scalar_select %p853_p12, 1, 0 }
  0x20   : > { %s858_s12 = scalar_select %p46_p10, %s742_s27, %s48_s7  }
  0x21   : > { %p860_p0 = por %p149_p13, %p61_p6  ;;  %s169_s14 = sand.u32 1, %s742_s27  }
  0x22   : > { %1078 = sst [smem:[#allocation17_spill]] %s858_s12  ;;  %s869_s15 = sshll.u32 %s169_s14, 3 }
  0x23   : > { %s1079_s13 = scalar_select %p860_p0, 1, 0 }
  0x24   : > { %s872_s16 = sshll.u32 %s750_s29, 7  ;;  %p876_p3 = pnand %p515_p2, %p841_p7 }
  0x25   : > { %s190_s18 = sand.u32 1, %s754_s0   ;;  %s1081_s2 = sld [smem:[#allocation18_spill]] }
  0x26   : > { %s1080_s17 = scalar_select %p876_p3, 1, 0 }
  0x27   : > { %s194_s22 = scalar_lea.vmem [#allocation7], %s869_s15  ;;  %s892_s24 = scalar_lea.sflag [#allocation8], %s190_s18 }
  0x28   : > { %s204_s23 = sshll.u32 %s194_s22, 4  ;;  %p898_p7 = pneg %p876_p3  ;;  %s889_s23 = int_to_ptr.vmem [resolvable:$true] %s204_s23 }
  0x2b   : > { %s885_s21 = scalar_lea.hbm %s1081_s2, %s872_s16  ;;  %s581_s19 = scalar_lea.hbm %s1081_s2, 256 }
  0x2c   : > { %s576_s5 = scalar_lea.hbm %s885_s21, 128  ;;  %p582_p10 = scmp.lt.u32.totalorder %s885_s21, %s1081_s2 }
  0x2d   : > { %p577_p6 = scmp.ne.s32.totalorder %s885_s21, %s576_s5  ;;  %p583_p13 = scmp.lt.u32.totalorder %s581_s19, %s576_s5 }
  0x2e   : > { %p585_p1 = scmp.lt.u32.totalorder %s576_s5, %s885_s21 }
  0x2f   : > { %p579_p8 = pnand %p898_p7, %p577_p6  ;;  %p584_p2 = por %p583_p13, %p582_p10 }
  0x31   : > { %p580_p9 = pneg %p579_p8  ;;  %p586_p4 = por %p585_p1, %p584_p2 }
  0x33   : > { %p587_p5 = pnand %p586_p4, %p580_p9 }
  0x35   : > { %590 = shalt.err (!%p587_p5)
}
  0x36   : > { %s591_s18 = scalar_lea.vmem %s889_s23, 128  ;;  %s757_s8 = smov [#allocation7]  }
  0x37   : > { %p592_p6 = scmp.ne.s32.totalorder %s889_s23, %s591_s18  ;;  %s596_s9 = sshll.u32 %s757_s8, 4  ;;  %s597_s9 = int_to_ptr.vmem [resolvable:$false] %s596_s9 }
  0x38   : > { %s598_s20 = scalar_lea.vmem %s597_s9, 256  ;;  %p599_p12 = scmp.lt.s32.totalorder %s889_s23, %s597_s9 }
  0x39   : > { %p594_p8 = pnand %p592_p6, %p898_p7  ;;  %p600_p11 = scmp.lt.s32.totalorder %s598_s20, %s591_s18 }
  0x3b   : > { %p595_p0 = pneg %p594_p8  ;;  %p601_p10 = por %p600_p11, %p599_p12 }
  0x3d   : > { %p602_p13 = pnand %p601_p10, %p595_p0 }
  0x3f   : > { %605 = shalt.err (!%p602_p13)
}
  0x40   : > { %507 = dma.hbm_to_vmem [thread:$0]  (!%p876_p3), %s885_s21, 128, %s889_s23, %s892_s24  }
  0x41   : > { %p1083_p1 = scmp.lt.s32.totalorder %s754_s0, 3  ;;  %p1084_p4 = scmp.ge.s32.totalorder %s754_s0, 1 }
  0x42   : > { %s934_s18 = scalar_lea.hbm %s1063_s1, %s872_s16  ;;  %s173_s8 = scalar_lea.vmem [#allocation4], %s869_s15 }
  0x43   : > { %p926_p5 = pnand %p1084_p4, %p1083_p1  ;;  %s183_s9 = sshll.u32 %s173_s8, 4  ;;  %s937_s9 = int_to_ptr.vmem [resolvable:$true] %s183_s9 }
  0x44   : > { %s943_s20 = scalar_lea.hbm %s1065_s3, %s872_s16  ;;  %s170_s2 = scalar_lea.sflag [#allocation5], %s169_s14 }
  0x45   : > { %s1085_s5 = scalar_select %p926_p5, 1, 0 }
  0x46   : > { %s606_s6 = scalar_lea.hbm %s934_s18, 128  ;;  %s611_s29 = scalar_lea.hbm %s1063_s1, 256 }
  0x47   : > { %p607_p11 = scmp.ne.s32.totalorder %s934_s18, %s606_s6  ;;  %p612_p9 = scmp.lt.u32.totalorder %s934_s18, %s1063_s1 }
  0x48   : > { %p613_p2 = scmp.lt.u32.totalorder %s611_s29, %s606_s6  ;;  %p615_p8 = scmp.lt.u32.totalorder %s606_s6, %s934_s18 }
  0x49   : > { %p609_p12 = pnand %p607_p11, %p898_p7 }
  0x4a   : > { %p614_p6 = por %p613_p2, %p612_p9 }
  0x4b   : > { %p610_p0 = pneg %p609_p12 }
  0x4c   : > { %p616_p10 = por %p615_p8, %p614_p6 }
  0x4e   : > { %p617_p13 = pnand %p616_p10, %p610_p0 }
  0x50   : > { %620 = shalt.err (!%p617_p13)
}
  0x51   : > { %s621_s14 = scalar_lea.vmem %s937_s9, 128  ;;  %s758_s16 = smov [#allocation4]  }
  0x52   : > { %p622_p1 = scmp.ne.s32.totalorder %s937_s9, %s621_s14  ;;  %s626_s21 = sshll.u32 %s758_s16, 4  ;;  %s627_s21 = int_to_ptr.vmem [resolvable:$false] %s626_s21 }
  0x53   : > { %s628_s12 = scalar_lea.vmem %s627_s21, 256  ;;  %p629_p12 = scmp.lt.s32.totalorder %s937_s9, %s627_s21 }
  0x54   : > { %p624_p4 = pnand %p622_p1, %p898_p7  ;;  %p630_p5 = scmp.lt.s32.totalorder %s628_s12, %s621_s14 }
  0x56   : > { %p625_p11 = pneg %p624_p4  ;;  %p631_p9 = por %p630_p5, %p629_p12 }
  0x58   : > { %p632_p2 = pnand %p631_p9, %p625_p11 }
  0x5a   : > { %635 = shalt.err (!%p632_p2)
}
  0x5b   : > { %504 = dma.hbm_to_vmem [thread:$0]  (!%p876_p3), %s934_s18, 128, %s937_s9, %s170_s2  }
  0x5c   : > { %s215_s29 = scalar_lea.vmem [#allocation9], %s869_s15  ;;  %s636_s23 = scalar_lea.hbm %s943_s20, 128 }
  0x5d   : > { %s225_s6 = sshll.u32 %s215_s29, 4  ;;  %p637_p0 = scmp.ne.s32.totalorder %s943_s20, %s636_s23  ;;  %s226_s6 = int_to_ptr.vmem [resolvable:$true] %s225_s6 }
  0x5e   : > { %s641_s8 = scalar_lea.hbm %s1065_s3, 256  ;;  %p642_p8 = scmp.lt.u32.totalorder %s943_s20, %s1065_s3 }
  0x5f   : > { %p639_p5 = pnand %p637_p0, %p898_p7  ;;  %p643_p10 = scmp.lt.u32.totalorder %s641_s8, %s636_s23 }
  0x60   : > { %p645_p1 = scmp.lt.u32.totalorder %s636_s23, %s943_s20 }
  0x61   : > { %p640_p6 = pneg %p639_p5  ;;  %p644_p13 = por %p643_p10, %p642_p8 }
  0x63   : > { %p646_p4 = por %p645_p1, %p644_p13 }
  0x65   : > { %p647_p11 = pnand %p646_p4, %p640_p6 }
  0x67   : > { %650 = shalt.err (!%p647_p11)
}
  0x68   : > { %s651_s2 = scalar_lea.vmem %s226_s6, 128  ;;  %s759_s15 = smov [#allocation9]  }
  0x69   : > { %p652_p12 = scmp.ne.s32.totalorder %s226_s6, %s651_s2  ;;  %s656_s18 = sshll.u32 %s759_s15, 4  ;;  %s657_s18 = int_to_ptr.vmem [resolvable:$false] %s656_s18 }
  0x6a   : > { %s658_s9 = scalar_lea.vmem %s657_s18, 256  ;;  %p659_p0 = scmp.lt.s32.totalorder %s226_s6, %s657_s18 }
  0x6b   : > { %p654_p9 = pnand %p652_p12, %p898_p7  ;;  %p660_p5 = scmp.lt.s32.totalorder %s658_s9, %s651_s2 }
  0x6d   : > { %p655_p2 = pneg %p654_p9  ;;  %p661_p3 = por %p660_p5, %p659_p0 }
  0x6f   : > { %p662_p8 = pnand %p661_p3, %p655_p2 }
  0x71   : > { %665 = shalt.err (!%p662_p8)
}
  0x72   : > { %p1086_p10 = scmp.ne.s32.totalorder %s1080_s17, 0  ;;  %p1087_p6 = scmp.ne.s32.totalorder %s1085_s5, 0 }
  0x73   : > { %s990_s7 = sand.u32 (!%p1087_p6), 1, %s738_s26   ;;  %p1088_p3 = scmp.ne.s32.totalorder (!%p1087_p6), %s1076_s10, 0 }
  0x74   : > { %510 = dma.hbm_to_vmem [thread:$0]  (!%p1086_p10), %s943_s20, 128, %s226_s6, %s892_s24  }
  0x75   : > { %234 = sbr.rel (%p1087_p6) target bundleno = 157 (0x9d), region = 32  ;;  %s993_s21 = sshll.u32 (!%p1087_p6), %s990_s7, 3 }
  0x76   : > { %s237_s12 = scalar_lea.sflag (!%p1087_p6), [#allocation5], %s990_s7  ;;  %s240_s29 = scalar_lea.vmem (!%p1087_p6), [#allocation4], %s993_s21 }
  0x7c   : > { %721 = dma.done.wait (%p1088_p3), %s237_s12, 128  }
  0x7d   : > { %723 = vsyncadd (%p1088_p3), %s237_s12, 4294967168  ;;  %s245_s17 = sand.u32 1, %s829_s30   ;;  %s249_s5 = scalar_lea.vmem [#allocation7], %s993_s21 }
  0x7e   : > { %s246_s24 = scalar_lea.sflag [#allocation8], %s245_s17 }
  0x7f   : > { %725 = dma.done.wait (%p1088_p3), %s246_s24, 256  }
  0x80   : > { %727 = vsyncadd (%p1088_p3), %s246_s24, 4294967040  ;;  %s295_s20 = sld [smem:[#allocation3]]  ;;  %s481_s6 = sld [smem:[#allocation3 + $0x1]]  ;;  %v299_v0 = vld [vmem:[%s249_s5] sm:$0xff]  ;;  %v306_v6 = vld [vmem:[%s240_s29] sm:$0xff] }
  0x81   : > { %s482_s23 = sld [smem:[#allocation3 + $0x2]]  ;;  %s483_s19 = sld [smem:[#allocation3 + $0x3]] }
  0x82   : > { %s258_s22 = scalar_lea.vmem [#allocation9], %s993_s21  ;;  %s290_s30 = scalar_lea.vmem [#allocation10], %s993_s21 }
  0x83   : > { %v302_v2 = vld [vmem:[%s258_s22] sm:$0xff]  ;;  %s330_s10 = sshll.u32 %s290_s30, 4  ;;  %s492_s8 = sshll.u32 %s746_s28, 7  ;;  %s1010_s10 = int_to_ptr.vmem [resolvable:$true] %s330_s10 }
  0x84   : > { %s1015_s2 = scalar_lea.hbm %s1066_s4, %s492_s8  ;;  %s314_s15 = scalar_lea.sflag [#allocation6], %s990_s7 }
  0x85   : > { %s666_s18 = scalar_lea.vmem %s1010_s10, 128  ;;  %p1089_p13 = scmp.ne.s32.totalorder %s1077_s11, 0 }
  0x86   : > { %v300_v1 = vstv %s295_s20  ;;  %v303_v3 = vstv %s481_s6  ;;  %p667_p7 = scmp.ne.s32.totalorder %s1010_s10, %s666_s18  ;;  %s760_s28 = smov [#allocation10]  }
  0x87   : > { %v301_v4 = vmul.f32 %v300_v1, %v299_v0  ;;  %v304_v5 = vmul.f32 %v303_v3, %v302_v2  ;;  %v307_v7 = vstv %s482_s23  ;;  %v310_v10 = vstv %s483_s19  ;;  %s670_s9 = sshll.u32 %s760_s28, 4  ;;  %s671_s9 = int_to_ptr.vmem [resolvable:$false] %s670_s9 }
  0x88   : > { %v308_v8 = vmul.f32 %v307_v7, %v306_v6  ;;  %p668_p1 = pnand %p667_p7, %p1089_p13  ;;  %s672_s21 = scalar_lea.vmem %s671_s9, 256 }
  0x89   : > { %v305_v9 = vadd.f32 %v304_v5, %v301_v4  ;;  %p673_p11 = scmp.lt.s32.totalorder %s1010_s10, %s671_s9  ;;  %p674_p12 = scmp.lt.s32.totalorder %s672_s21, %s666_s18 }
  0x8a   : > { %p669_p4 = pneg %p668_p1 }
  0x8b   : > { %v309_v11 = vadd.f32 %v308_v8, %v305_v9  ;;  %p675_p9 = por %p674_p12, %p673_p11 }
  0x8d   : > { %v311_v12 = vadd.f32 %v310_v10, %v309_v11  ;;  %p676_p2 = pnand %p675_p9, %p669_p4 }
  0x8f   : > { %312 = vst [vmem:[%s290_s30] sm:$0xff] %v311_v12 }
  0x90   : > { %679 = shalt.err (!%p676_p2)
}
  0x91   : > { %s680_s7 = scalar_lea.hbm %s1015_s2, 128  ;;  %s684_s17 = scalar_lea.hbm %s1066_s4, 256 }
  0x92   : > { %p681_p0 = scmp.ne.s32.totalorder %s1015_s2, %s680_s7  ;;  %p685_p10 = scmp.lt.u32.totalorder %s1015_s2, %s1066_s4 }
  0x93   : > { %p686_p6 = scmp.lt.u32.totalorder %s684_s17, %s680_s7  ;;  %p688_p7 = scmp.lt.u32.totalorder %s680_s7, %s1015_s2 }
  0x94   : > { %p682_p5 = pnand %p681_p0, %p1089_p13 }
  0x95   : > { %p687_p3 = por %p686_p6, %p685_p10 }
  0x96   : > { %p683_p8 = pneg %p682_p5 }
  0x97   : > { %p689_p1 = por %p688_p7, %p687_p3 }
  0x99   : > { %p690_p4 = pnand %p689_p1, %p683_p8 }
  0x9b   : > { %693 = shalt.err (!%p690_p4)
}
  0x9c   : > { %499 = dma.vmem_to_hbm [thread:$0]  (%p1089_p13), %s1010_s10, 128, %s1015_s2, %s314_s15  }
  0x9d PF: > { %s342_s20 = sand.u32 1, %s734_s25   ;;  %p1090_p11 = scmp.ne.s32.totalorder %s1079_s13, 0 }
  0x9e   : > { %p1091_p12 = scmp.ge.s32.totalorder %s754_s0, 2  ;;  %s343_s6 = scalar_lea.sflag [#allocation6], %s342_s20 }
  0xa0   : > { %p512_p9 = pnand %p1091_p12, %p1090_p11 }
  0xa2   : > { %729 = dma.done.wait (!%p512_p9), %s343_s6, 128  }
  0xa3   : > { %731 = vsyncadd (!%p512_p9), %s343_s6, 4294967168  ;;  %s27_s0 = sadd.s32 1, %s754_s0   ;;  %s1092_s11 = sld [smem:[#allocation17_spill]] }
  0xa4   : > { %p24_p2 = scmp.ge.s32.totalorder %s27_s0, 4   ;;  %s1093_s28 = sld [smem:[#allocation15_spill]] }
  0xa5   : > { %s1094_s29 = sld [smem:[#allocation16_spill]]  ;;  %s1095_s25 = smov %s738_s26 }
  0xa6   : > { %s1096_s26 = smov %s742_s27  ;;  %26 = sbr.rel (!%p24_p2) target bundleno = 20 (0x14), region = 101 }
  0xa9   : > { %s1097_s27 = smov %s1092_s11 }
  0xad   :  { %348 = vsyncpa [#allocation5], 1 }
  0xae   :  { %350 = vsyncpa [#allocation5 + $0x1], 1 }
  0xaf   :  { %351 = vsyncpa [#allocation8], 1 }
  0xb0   :  { %353 = vsyncpa [#allocation8 + $0x1], 1 }
  0xb1   :  { %354 = vsyncpa [#allocation6], 1 }
  0xb2   :  { %356 = vsyncpa [#allocation6 + $0x1], 1 }

</bundles_post_ra>
